<compile_context>
chip_gen: v5e
topology: v5e:2x2
jax: 0.10.0
libtpu: 0.0.40
codegen_flags: <defaults>
</compile_context>

<pallas_src>
import math

import jax
import jax.numpy as jnp
from jax.experimental import pallas as pl
from jax.experimental.pallas import tpu as pltpu


def _copy_kernel(x_ref, o_ref):
    o_ref[...] = x_ref[...]


_MAX_BLOCK_BYTES = 2 * 1024 * 1024  # per buffer; 4 double-buffered copies <= 8 MiB


def _pick_lane(total):
    for lane in (1024, 512, 256, 128):
        if total % lane == 0:
            return lane
    return None


def _pick_row_tile(rows, lane, itemsize):
    for tm in (1024, 512, 256, 128, 64, 32, 16, 8):
        if rows % tm == 0 and tm * lane * itemsize <= _MAX_BLOCK_BYTES:
            return tm
    # Small / awkward row counts: one block spanning all rows.  A block dim
    # equal to the full array dim is always legal regardless of (8, 128).
    return rows


def _flat_out_shape(shape, start_dim, end_dim):
    nd = len(shape)
    sd = start_dim if start_dim >= 0 else start_dim + nd
    ed = end_dim if end_dim >= 0 else end_dim + nd
    assert 0 <= sd <= ed < nd, (start_dim, end_dim, shape)
    mid = 1
    for d in shape[sd:ed + 1]:
        mid *= d
    return shape[:sd] + (mid,) + shape[ed + 1:]


def flatten_forward(x, start_dim=1, end_dim=-1):
    """Pallas equivalent of torch.flatten(x, start_dim, end_dim)."""
    out_shape = _flat_out_shape(x.shape, start_dim, end_dim)
    total = math.prod(x.shape) if x.shape else 1

    if total == 0:
        return jnp.reshape(x, out_shape)

    lane = _pick_lane(total)
    if lane is None:
        # TODO(synk): element counts not divisible by 128 fall back to a single
        # full-array block; a cdiv grid with a masked tail would keep the
        # pipeline for huge ragged sizes.
        rows, lane, tm = 1, total, 1
        view = jnp.reshape(x, (rows, lane))
    else:
        rows = total // lane
        view = jnp.reshape(x, (rows, lane))
        tm = _pick_row_tile(rows, lane, x.dtype.itemsize)

    grid = (rows // tm,)
    copied = pl.pallas_call(
        _copy_kernel,
        out_shape=jax.ShapeDtypeStruct((rows, lane), x.dtype),
        grid=grid,
        in_specs=[pl.BlockSpec((tm, lane), lambda i: (i, 0))],
        out_specs=pl.BlockSpec((tm, lane), lambda i: (i, 0)),
        compiler_params=pltpu.CompilerParams(
            dimension_semantics=("parallel",)),
    )(view)

    return jnp.reshape(copied, out_shape)


if __name__ == "__main__":
    key = jax.random.PRNGKey(0)
    N, C, H, W = 2, 4, 16, 16
    x = jax.random.normal(key, (N, C, H, W), dtype=jnp.float32)

    # Default module config: Flatten(start_dim=1, end_dim=-1)
    out = flatten_forward(x, start_dim=1, end_dim=-1)
    out = jax.block_until_ready(out)

    ref = jnp.reshape(x, (N, C * H * W))
    assert out.shape == (N, C * H * W), out.shape
    assert out.dtype == x.dtype
    assert jnp.array_equal(out, ref)

    # A second configuration: full flatten (start_dim=0).
    out_full = jax.block_until_ready(flatten_forward(x, start_dim=0, end_dim=-1))
    assert out_full.shape == (N * C * H * W,)
    assert jnp.array_equal(out_full, jnp.reshape(x, (-1,)))

    print("KERNEL_OK")
</pallas_src>

<mosaic_0001>
module attributes {stable_mosaic.version = 11 : i64} {
  func.func @_copy_kernel(%arg0: i32, %arg1: memref<2x1024xf32, #tpu.memory_space<vmem>>, %arg2: memref<2x1024xf32, #tpu.memory_space<vmem>>) attributes {dimension_semantics = [#tpu.dimension_semantics<parallel>], iteration_bounds = array<i64: 1>, scalar_prefetch = 0 : i64, scratch_operands = 0 : i64, tpu.core_type = #tpu.core_type<tc>, window_params = [{transform_indices = @transform_0, window_bounds = array<i64: 2, 1024>}, {transform_indices = @transform_1, window_bounds = array<i64: 2, 1024>}]} {
    %c0 = arith.constant 0 : index
    %c0_0 = arith.constant 0 : index
    %0 = vector.load %arg1[%c0, %c0_0] : memref<2x1024xf32, #tpu.memory_space<vmem>>, vector<2x1024xf32>
    %c0_1 = arith.constant 0 : index
    %c0_2 = arith.constant 0 : index
    %1 = vector.load %arg2[%c0_1, %c0_2] : memref<2x1024xf32, #tpu.memory_space<vmem>>, vector<2x1024xf32>
    tpu.vector_store %arg2[%c0_1, %c0_2], %0 {strides = array<i32>} : memref<2x1024xf32, #tpu.memory_space<vmem>>, vector<2x1024xf32>,
    return
  }
  func.func @transform_0(%arg0: i32) -> (i32, i32) {
    %c0_i32 = arith.constant 0 : i32
    %c0_i32_0 = arith.constant 0 : i32
    return %arg0, %c0_i32 : i32, i32
  }
  func.func @transform_1(%arg0: i32) -> (i32, i32) {
    %c0_i32 = arith.constant 0 : i32
    %c0_i32_0 = arith.constant 0 : i32
    return %arg0, %c0_i32 : i32, i32
  }
}

</mosaic_0001>

<bundles_post_ra>
// kernel: tpu_custom_call.1
= control target key start
LH: loop header
LB: loop body
LE: loop exit
PB: predicated region body
PF: predicated region fallthrough
CT: control target
= control target key end

     0   :  { %6 = vsyncpa [#allocation3], 0  ;;  %s116_s0 = inlined_call_operand.hbm [shape: f32[2,1024], index: 0, kind: input, shape index: {}]   ;;  %s117_s1 = inlined_call_operand.hbm [shape: f32[2,1024], index: 1, kind: output, shape index: {}]  }
   0x1   :  { %7 = vsyncpa [#allocation4], 0  ;;  %s13_s8 = sshll.u32 %s116_s0, 4  ;;  %s98_s9 = smov [#allocation2]   ;;  %s14_s8 = int_to_ptr.hbm [resolvable:$true] %s13_s8 }
   0x2   :  { %s15_s10 = sshll.u32 %s98_s9, 4  ;;  %s16_s10 = int_to_ptr.vmem [resolvable:$true] %s15_s10 }
   0x3   :  { %18 = dma.hbm_to_vmem [thread:$0]  %s14_s8, 256, %s16_s10, [#allocation3]  }
   0x4   :  { %94 = dma.done.wait [#allocation3], 256  }
   0x5   :  { %95 = vsyncadd [#allocation3], 4294967040  ;;  %s99_s11 = smov [#allocation5]   ;;  %s34_s15 = sshll.u32 %s117_s1, 4  ;;  %v23_v0 = vld [vmem:[#allocation2] sm:$0xff]  ;;  %v24_v1 = vld [vmem:[#allocation2 + $0x8] sm:$0xff]  ;;  %s35_s15 = int_to_ptr.hbm [resolvable:$true] %s34_s15 }
   0x6   :  { %s32_s12 = sshll.u32 %s99_s11, 4  ;;  %25 = vst [vmem:[#allocation5] sm:$0xff] %v23_v0  ;;  %s33_s12 = int_to_ptr.vmem [resolvable:$true] %s32_s12 }
   0x7   :  { %26 = vst [vmem:[#allocation5 + $0x8] sm:$0xff] %v24_v1 }
   0x8   :  { %37 = dma.vmem_to_hbm [thread:$0]  %s33_s12, 256, %s35_s15, [#allocation4]  }
   0x9   :  { %96 = dma.done.wait [#allocation4], 256  }
   0xa   :  { %97 = vsyncadd [#allocation4], 4294967040 }
   0xb   :  { %42 = vsyncpa [#allocation3], 1 }
   0xc   :  { %43 = vsyncpa [#allocation4], 1 }

</bundles_post_ra>
